<compile_context>
chip_gen: v6e
topology: v6e:2x2x1
jax: 0.10.0
libtpu: 0.0.40
codegen_flags: <defaults>
</compile_context>

<pallas_src>
import math

import jax
import jax.numpy as jnp
from jax.experimental import pallas as pl
from jax.experimental.pallas import tpu as pltpu

# ---------------- model config (mirrors DiffusionMLP.__init__) ---------------
OBS_DIM = 12
ACTION_DIM = 4
TIME_EMBED_DIM = 32
HALF_DIM = TIME_EMBED_DIM // 2
HIDDEN_SIZES = (32, 32)
H1, H2 = HIDDEN_SIZES
IN_DIM = OBS_DIM + ACTION_DIM + TIME_EMBED_DIM          # 48
ACTIVATION = "relu"          # args['activation_func']
USE_FEATURE_NORM = True      # args['use_feature_normalization']
LN_EPS = 1e-5                # PyTorch nn.LayerNorm default
_TE_SCALE = math.log(10000.0) / (HALF_DIM - 1)

# ---------------- packed-parameter layout (one (128,128) f32 buffer) ---------
# rows 0..7   : ln0_g, ln0_b, b1, ln1_g, ln1_b, b2, ln2_g, ln2_b (lane-padded)
# rows 8..55  : w1  (48 x 32)
# rows 56..87 : w2  (32 x 32)
# rows 88..119: w3  (32 x ACTION_DIM)
# row 120     : b3  (ACTION_DIM,)
W1_ROW = 8
W2_ROW = W1_ROW + IN_DIM          # 56
W3_ROW = W2_ROW + H1              # 88
B3_ROW = W3_ROW + H2              # 120
PACK_ROWS = 128
PACK_COLS = 128
# Packing layout assumes everything fits in one (128,128) buffer.
assert B3_ROW + 1 <= PACK_ROWS, "param pack overflows rows; adjust layout"
assert max(IN_DIM, H1, H2, ACTION_DIM) <= PACK_COLS, "feature dim > 128 lanes"

TILE_B_MAX = 2048                 # rows per grid step (multiple of 8)


def _round_up(x, m):
    return (x + m - 1) // m * m


def _activation(x):
    if ACTIVATION == "relu":
        return jnp.maximum(x, 0.0)
    if ACTIVATION in ("silu", "swish"):
        return x * jax.nn.sigmoid(x)
    if ACTIVATION == "gelu":
        return jax.nn.gelu(x)
    return jnp.tanh(x)


def _layernorm(x, gamma, beta, eps=LN_EPS):
    mu = jnp.mean(x, axis=-1, keepdims=True)
    var = jnp.mean((x - mu) ** 2, axis=-1, keepdims=True)
    return (x - mu) * jax.lax.rsqrt(var + eps) * gamma + beta


# ------------------------------- kernel --------------------------------------
def diffusion_mlp_kernel(obs_ref, act_ref, time_ref, p_ref, o_ref):
    f32 = jnp.float32
    obs = obs_ref[...].astype(f32)                    # (T, 12)
    act = act_ref[...].astype(f32)                    # (T, 4)
    t = time_ref[...].astype(f32)                     # (T, 1)

    # --- sinusoidal time embedding (computed on-chip; EUP exp/sin/cos) -------
    k = jax.lax.broadcasted_iota(jnp.int32, (1, HALF_DIM), 1).astype(f32)
    freqs = jnp.exp(-_TE_SCALE * k)                   # (1, 16)
    ang = t * freqs                                   # (T, 16)
    te_sin = jnp.sin(ang)
    te_cos = jnp.cos(ang)

    # --- packed params (single VMEM-resident buffer, static slices) ----------
    vecs = p_ref[0:8, :]                              # (8, 128) aligned load
    ln0_g = vecs[0:1, 0:IN_DIM]
    ln0_b = vecs[1:2, 0:IN_DIM]
    b1 = vecs[2:3, 0:H1]
    ln1_g = vecs[3:4, 0:H1]
    ln1_b = vecs[4:5, 0:H1]
    b2 = vecs[5:6, 0:H2]
    ln2_g = vecs[6:7, 0:H2]
    ln2_b = vecs[7:8, 0:H2]
    w1 = p_ref[W1_ROW:W1_ROW + IN_DIM, 0:H1]          # (48, 32)
    w2 = p_ref[W2_ROW:W2_ROW + H1, 0:H2]              # (32, 32)
    w3 = p_ref[W3_ROW:W3_ROW + H2, 0:ACTION_DIM]      # (32, 4)
    b3 = p_ref[B3_ROW:B3_ROW + 1, 0:ACTION_DIM]       # (1, 4)

    o0 = OBS_DIM
    o1 = o0 + ACTION_DIM
    o2 = o1 + HALF_DIM

    # --- input LayerNorm over the *virtual* concat [obs, act, sin, cos] ------
    # (piecewise, so no explicit lane concat is needed)
    if USE_FEATURE_NORM:
        n = f32(IN_DIM)
        s = (jnp.sum(obs, -1, keepdims=True) + jnp.sum(act, -1, keepdims=True)
             + jnp.sum(te_sin, -1, keepdims=True)
             + jnp.sum(te_cos, -1, keepdims=True))
        mu = s / n
        ss = (jnp.sum((obs - mu) ** 2, -1, keepdims=True)
              + jnp.sum((act - mu) ** 2, -1, keepdims=True)
              + jnp.sum((te_sin - mu) ** 2, -1, keepdims=True)
              + jnp.sum((te_cos - mu) ** 2, -1, keepdims=True))
        inv = jax.lax.rsqrt(ss / n + LN_EPS)

        def _norm_piece(piece, lo, hi):
            return (piece - mu) * inv * ln0_g[:, lo:hi] + ln0_b[:, lo:hi]

        obs_n = _norm_piece(obs, 0, o0)
        act_n = _norm_piece(act, o0, o1)
        sin_n = _norm_piece(te_sin, o1, o2)
        cos_n = _norm_piece(te_cos, o2, IN_DIM)
    else:
        obs_n, act_n, sin_n, cos_n = obs, act, te_sin, te_cos

    # --- hidden layer 1: split GEMM over the concat pieces -------------------
    # TODO(synk): collapse into one lane-concat + single (T,48)x(48,32) GEMM if
    # bundle counts show the 4-way split / 8 masked reductions matter post-fix.
    h = (jnp.dot(obs_n, w1[0:o0, :], preferred_element_type=jnp.float32)
         + jnp.dot(act_n, w1[o0:o1, :], preferred_element_type=jnp.float32)
         + jnp.dot(sin_n, w1[o1:o2, :], preferred_element_type=jnp.float32)
         + jnp.dot(cos_n, w1[o2:IN_DIM, :], preferred_element_type=jnp.float32)
         + b1)
    h = _activation(h)
    h = _layernorm(h, ln1_g, ln1_b)

    # --- hidden layer 2 -------------------------------------------------------
    h = jnp.dot(h, w2, preferred_element_type=jnp.float32) + b2
    h = _activation(h)
    h = _layernorm(h, ln2_g, ln2_b)

    # --- output Linear (narrow ACTION_DIM store; DMA only writes 16 B/row) ---
    out = jnp.dot(h, w3, preferred_element_type=jnp.float32) + b3   # (T, 4)
    o_ref[...] = out.astype(o_ref.dtype)


# ------------------------------ wrapper ---------------------------------------
def pack_params(params):
    p = jnp.zeros((PACK_ROWS, PACK_COLS), jnp.float32)
    p = p.at[0, :IN_DIM].set(params["ln0_g"].reshape(-1))
    p = p.at[1, :IN_DIM].set(params["ln0_b"].reshape(-1))
    p = p.at[2, :H1].set(params["b1"].reshape(-1))
    p = p.at[3, :H1].set(params["ln1_g"].reshape(-1))
    p = p.at[4, :H1].set(params["ln1_b"].reshape(-1))
    p = p.at[5, :H2].set(params["b2"].reshape(-1))
    p = p.at[6, :H2].set(params["ln2_g"].reshape(-1))
    p = p.at[7, :H2].set(params["ln2_b"].reshape(-1))
    p = p.at[W1_ROW:W1_ROW + IN_DIM, :H1].set(params["w1"])
    p = p.at[W2_ROW:W2_ROW + H1, :H2].set(params["w2"])
    p = p.at[W3_ROW:W3_ROW + H2, :ACTION_DIM].set(params["w3"])
    p = p.at[B3_ROW, :ACTION_DIM].set(params["b3"].reshape(-1))
    return p


@jax.jit
def diffusion_mlp_forward(obs, action, time, params):
    B = obs.shape[0]
    packed = pack_params(params)

    # >=2 grid steps when possible (v7x megacore), tile a multiple of 8,
    # capped so double-buffers + temporaries stay well under 32 MiB VMEM.
    tile_b = min(TILE_B_MAX, _round_up(pl.cdiv(max(B, 1), 2), 8))
    grid = (pl.cdiv(B, tile_b),)

    obs_f = obs.astype(jnp.float32)
    act_f = action.astype(jnp.float32)
    time_f = time.astype(jnp.float32).reshape(B, 1)

    cost = pl.CostEstimate(
        flops=2 * B * (IN_DIM * H1 + H1 * H2 + H2 * ACTION_DIM),
        transcendentals=B * (TIME_EMBED_DIM + 3),
        bytes_accessed=B * (OBS_DIM + ACTION_DIM + 1 + ACTION_DIM) * 4
        + PACK_ROWS * PACK_COLS * 4,
    )

    return pl.pallas_call(
        diffusion_mlp_kernel,
        out_shape=jax.ShapeDtypeStruct((B, ACTION_DIM), jnp.float32),
        grid=grid,
        in_specs=[
            pl.BlockSpec((tile_b, OBS_DIM), lambda i: (i, 0)),
            pl.BlockSpec((tile_b, ACTION_DIM), lambda i: (i, 0)),
            pl.BlockSpec((tile_b, 1), lambda i: (i, 0)),
            pl.BlockSpec((PACK_ROWS, PACK_COLS), lambda i: (0, 0)),
        ],
        out_specs=pl.BlockSpec((tile_b, ACTION_DIM), lambda i: (i, 0)),
        compiler_params=pltpu.CompilerParams(
            dimension_semantics=("parallel",),
            vmem_limit_bytes=32 * 1024 * 1024,
        ),
        cost_estimate=cost,
    )(obs_f, act_f, time_f, packed)


# ------------------------- params / reference --------------------------------
def make_params(key):
    dims = [IN_DIM, *HIDDEN_SIZES, ACTION_DIM]
    keys = jax.random.split(key, len(dims) - 1)
    params = {
        "ln0_g": jnp.ones((1, IN_DIM), jnp.float32),
        "ln0_b": jnp.zeros((1, IN_DIM), jnp.float32),
    }
    names = ["1", "2", "3"]
    for i, (din, dout) in enumerate(zip(dims[:-1], dims[1:])):
        w = jax.random.normal(keys[i], (din, dout), jnp.float32) / jnp.sqrt(
            jnp.float32(din)
        )
        params[f"w{names[i]}"] = w
        params[f"b{names[i]}"] = jnp.zeros((1, dout), jnp.float32)
    for i, h in enumerate(HIDDEN_SIZES, start=1):
        params[f"ln{i}_g"] = jnp.ones((1, h), jnp.float32)
        params[f"ln{i}_b"] = jnp.zeros((1, h), jnp.float32)
    return params


def sinusoidal_time_embedding(time, dim):
    half_dim = dim // 2
    scale = math.log(10000.0) / (half_dim - 1)
    freqs = jnp.exp(jnp.arange(half_dim, dtype=jnp.float32) * -scale)
    emb = time[:, None].astype(jnp.float32) * freqs[None, :]
    return jnp.concatenate([jnp.sin(emb), jnp.cos(emb)], axis=-1)


def reference_forward(obs, action, time, params):
    """Pure-JAX reference mirroring the PyTorch forward."""
    t_emb = sinusoidal_time_embedding(time, TIME_EMBED_DIM)
    x = jnp.concatenate([obs, action, t_emb], axis=-1)
    if USE_FEATURE_NORM:
        x = _layernorm(x, params["ln0_g"], params["ln0_b"])
    h = _activation(x @ params["w1"] + params["b1"])
    h = _layernorm(h, params["ln1_g"], params["ln1_b"])
    h = _activation(h @ params["w2"] + params["b2"])
    h = _layernorm(h, params["ln2_g"], params["ln2_b"])
    return h @ params["w3"] + params["b3"]


if __name__ == "__main__":
    key = jax.random.PRNGKey(0)
    k_data, k_params = jax.random.split(key)
    params = make_params(k_params)

    def check(batch, k):
        k_obs, k_act, k_time = jax.random.split(k, 3)
        obs = jax.random.normal(k_obs, (batch, OBS_DIM), jnp.float32)
        action = jax.random.normal(k_act, (batch, ACTION_DIM), jnp.float32)
        time = jax.random.randint(k_time, (batch,), 0, 100).astype(jnp.float32)

        out = jax.block_until_ready(
            diffusion_mlp_forward(obs, action, time, params))
        ref = reference_forward(obs, action, time, params)
        assert out.shape == (batch, ACTION_DIM)
        assert jnp.allclose(out, ref, atol=1e-3, rtol=1e-3), (out, ref)

    k1, k2 = jax.random.split(k_data)
    check(2, k1)    # small batch
    check(19, k2)   # non-multiple-of-8 batch exercises the partial last block

    print("KERNEL_OK")
</pallas_src>

<mosaic_0001>
module attributes {stable_mosaic.version = 11 : i64} {
  func.func @diffusion_mlp_kernel(%arg0: i32, %arg1: memref<8x12xf32, #tpu.memory_space<vmem>>, %arg2: memref<8x4xf32, #tpu.memory_space<vmem>>, %arg3: memref<8x1xf32, #tpu.memory_space<vmem>>, %arg4: memref<128x128xf32, #tpu.memory_space<vmem>>, %arg5: memref<8x4xf32, #tpu.memory_space<vmem>>) attributes {dimension_semantics = [#tpu.dimension_semantics<parallel>], iteration_bounds = array<i64: 1>, scalar_prefetch = 0 : i64, scratch_operands = 0 : i64, tpu.core_type = #tpu.core_type<tc>, window_params = [{transform_indices = @transform_0, window_bounds = array<i64: 8, 12>}, {transform_indices = @transform_1, window_bounds = array<i64: 8, 4>}, {transform_indices = @transform_2, window_bounds = array<i64: 8, 1>}, {pipeline_mode = #tpu.pipeline_mode<synchronous>, transform_indices = @transform_3, window_bounds = array<i64: 128, 128>}, {transform_indices = @transform_4, window_bounds = array<i64: 8, 4>}]} {
    %c0 = arith.constant 0 : index
    %c0_0 = arith.constant 0 : index
    %0 = vector.load %arg1[%c0, %c0_0] : memref<8x12xf32, #tpu.memory_space<vmem>>, vector<8x12xf32>
    %c0_1 = arith.constant 0 : index
    %c0_2 = arith.constant 0 : index
    %1 = vector.load %arg2[%c0_1, %c0_2] : memref<8x4xf32, #tpu.memory_space<vmem>>, vector<8x4xf32>
    %c0_3 = arith.constant 0 : index
    %c0_4 = arith.constant 0 : index
    %2 = vector.load %arg3[%c0_3, %c0_4] : memref<8x1xf32, #tpu.memory_space<vmem>>, vector<8x1xf32>
    %3 = tpu.iota {dimensions = array<i32: 1>} : vector<1x16xi32>
    %4 = arith.sitofp %3 : vector<1x16xi32> to vector<1x16xf32>
    %cst = arith.constant -0.614022672 : f32
    %5 = vector.broadcast %cst : f32 to vector<1x16xf32>
    %6 = arith.mulf %5, %4 : vector<1x16xf32>
    %7 = math.exp %6 : vector<1x16xf32>
    %8 = vector.broadcast %2 : vector<8x1xf32> to vector<8x16xf32>
    %9 = vector.broadcast %7 : vector<1x16xf32> to vector<8x16xf32>
    %10 = arith.mulf %8, %9 : vector<8x16xf32>
    %11 = math.sin %10 : vector<8x16xf32>
    %12 = math.cos %10 : vector<8x16xf32>
    %c0_5 = arith.constant 0 : index
    %c0_6 = arith.constant 0 : index
    %13 = vector.load %arg4[%c0_5, %c0_6] : memref<128x128xf32, #tpu.memory_space<vmem>>, vector<8x128xf32>
    %14 = vector.extract_strided_slice %13 {offsets = [0, 0], sizes = [1, 48], strides = [1, 1]} : vector<8x128xf32> to vector<1x48xf32>
    %15 = vector.extract_strided_slice %13 {offsets = [1, 0], sizes = [1, 48], strides = [1, 1]} : vector<8x128xf32> to vector<1x48xf32>
    %16 = vector.extract_strided_slice %13 {offsets = [2, 0], sizes = [1, 32], strides = [1, 1]} : vector<8x128xf32> to vector<1x32xf32>
    %17 = vector.extract_strided_slice %13 {offsets = [3, 0], sizes = [1, 32], strides = [1, 1]} : vector<8x128xf32> to vector<1x32xf32>
    %18 = vector.extract_strided_slice %13 {offsets = [4, 0], sizes = [1, 32], strides = [1, 1]} : vector<8x128xf32> to vector<1x32xf32>
    %19 = vector.extract_strided_slice %13 {offsets = [5, 0], sizes = [1, 32], strides = [1, 1]} : vector<8x128xf32> to vector<1x32xf32>
    %20 = vector.extract_strided_slice %13 {offsets = [6, 0], sizes = [1, 32], strides = [1, 1]} : vector<8x128xf32> to vector<1x32xf32>
    %21 = vector.extract_strided_slice %13 {offsets = [7, 0], sizes = [1, 32], strides = [1, 1]} : vector<8x128xf32> to vector<1x32xf32>
    %c8 = arith.constant 8 : index
    %c0_7 = arith.constant 0 : index
    %22 = vector.load %arg4[%c8, %c0_7] : memref<128x128xf32, #tpu.memory_space<vmem>>, vector<48x32xf32>
    %c56 = arith.constant 56 : index
    %c0_8 = arith.constant 0 : index
    %23 = vector.load %arg4[%c56, %c0_8] : memref<128x128xf32, #tpu.memory_space<vmem>>, vector<32x32xf32>
    %c88 = arith.constant 88 : index
    %c0_9 = arith.constant 0 : index
    %24 = vector.load %arg4[%c88, %c0_9] : memref<128x128xf32, #tpu.memory_space<vmem>>, vector<32x4xf32>
    %c120 = arith.constant 120 : index
    %c0_10 = arith.constant 0 : index
    %25 = vector.load %arg4[%c120, %c0_10] : memref<128x128xf32, #tpu.memory_space<vmem>>, vector<1x4xf32>
    %cst_11 = arith.constant dense<0.000000e+00> : vector<8xf32>
    %26 = vector.multi_reduction <add>, %0, %cst_11 [1] : vector<8x12xf32> to vector<8xf32>
    %27 = vector.shape_cast %26 : vector<8xf32> to vector<8x1xf32>
    %cst_12 = arith.constant dense<0.000000e+00> : vector<8xf32>
    %28 = vector.multi_reduction <add>, %1, %cst_12 [1] : vector<8x4xf32> to vector<8xf32>
    %29 = vector.shape_cast %28 : vector<8xf32> to vector<8x1xf32>
    %30 = arith.addf %27, %29 : vector<8x1xf32>
    %cst_13 = arith.constant dense<0.000000e+00> : vector<8xf32>
    %31 = vector.multi_reduction <add>, %11, %cst_13 [1] : vector<8x16xf32> to vector<8xf32>
    %32 = vector.shape_cast %31 : vector<8xf32> to vector<8x1xf32>
    %33 = arith.addf %30, %32 : vector<8x1xf32>
    %cst_14 = arith.constant dense<0.000000e+00> : vector<8xf32>
    %34 = vector.multi_reduction <add>, %12, %cst_14 [1] : vector<8x16xf32> to vector<8xf32>
    %35 = vector.shape_cast %34 : vector<8xf32> to vector<8x1xf32>
    %36 = arith.addf %33, %35 : vector<8x1xf32>
    %cst_15 = arith.constant 4.800000e+01 : f32
    %37 = vector.broadcast %cst_15 : f32 to vector<8x1xf32>
    %38 = arith.divf %36, %37 : vector<8x1xf32>
    %39 = vector.broadcast %38 : vector<8x1xf32> to vector<8x12xf32>
    %40 = arith.subf %0, %39 : vector<8x12xf32>
    %41 = arith.mulf %40, %40 : vector<8x12xf32>
    %cst_16 = arith.constant dense<0.000000e+00> : vector<8xf32>
    %42 = vector.multi_reduction <add>, %41, %cst_16 [1] : vector<8x12xf32> to vector<8xf32>
    %43 = vector.shape_cast %42 : vector<8xf32> to vector<8x1xf32>
    %44 = vector.broadcast %38 : vector<8x1xf32> to vector<8x4xf32>
    %45 = arith.subf %1, %44 : vector<8x4xf32>
    %46 = arith.mulf %45, %45 : vector<8x4xf32>
    %cst_17 = arith.constant dense<0.000000e+00> : vector<8xf32>
    %47 = vector.multi_reduction <add>, %46, %cst_17 [1] : vector<8x4xf32> to vector<8xf32>
    %48 = vector.shape_cast %47 : vector<8xf32> to vector<8x1xf32>
    %49 = arith.addf %43, %48 : vector<8x1xf32>
    %50 = vector.broadcast %38 : vector<8x1xf32> to vector<8x16xf32>
    %51 = arith.subf %11, %50 : vector<8x16xf32>
    %52 = arith.mulf %51, %51 : vector<8x16xf32>
    %cst_18 = arith.constant dense<0.000000e+00> : vector<8xf32>
    %53 = vector.multi_reduction <add>, %52, %cst_18 [1] : vector<8x16xf32> to vector<8xf32>
    %54 = vector.shape_cast %53 : vector<8xf32> to vector<8x1xf32>
    %55 = arith.addf %49, %54 : vector<8x1xf32>
    %56 = vector.broadcast %38 : vector<8x1xf32> to vector<8x16xf32>
    %57 = arith.subf %12, %56 : vector<8x16xf32>
    %58 = arith.mulf %57, %57 : vector<8x16xf32>
    %cst_19 = arith.constant dense<0.000000e+00> : vector<8xf32>
    %59 = vector.multi_reduction <add>, %58, %cst_19 [1] : vector<8x16xf32> to vector<8xf32>
    %60 = vector.shape_cast %59 : vector<8xf32> to vector<8x1xf32>
    %61 = arith.addf %55, %60 : vector<8x1xf32>
    %cst_20 = arith.constant 4.800000e+01 : f32
    %62 = vector.broadcast %cst_20 : f32 to vector<8x1xf32>
    %63 = arith.divf %61, %62 : vector<8x1xf32>
    %cst_21 = arith.constant 9.99999974E-6 : f32
    %64 = vector.broadcast %cst_21 : f32 to vector<8x1xf32>
    %65 = arith.addf %63, %64 : vector<8x1xf32>
    %66 = math.rsqrt %65 : vector<8x1xf32>
    %67 = vector.broadcast %38 : vector<8x1xf32> to vector<8x12xf32>
    %68 = arith.subf %0, %67 : vector<8x12xf32>
    %69 = vector.broadcast %66 : vector<8x1xf32> to vector<8x12xf32>
    %70 = arith.mulf %68, %69 : vector<8x12xf32>
    %71 = vector.extract_strided_slice %14 {offsets = [0, 0], sizes = [1, 12], strides = [1, 1]} : vector<1x48xf32> to vector<1x12xf32>
    %72 = vector.broadcast %71 : vector<1x12xf32> to vector<8x12xf32>
    %73 = arith.mulf %70, %72 : vector<8x12xf32>
    %74 = vector.extract_strided_slice %15 {offsets = [0, 0], sizes = [1, 12], strides = [1, 1]} : vector<1x48xf32> to vector<1x12xf32>
    %75 = vector.broadcast %74 : vector<1x12xf32> to vector<8x12xf32>
    %76 = arith.addf %73, %75 : vector<8x12xf32>
    %77 = vector.broadcast %38 : vector<8x1xf32> to vector<8x4xf32>
    %78 = arith.subf %1, %77 : vector<8x4xf32>
    %79 = vector.broadcast %66 : vector<8x1xf32> to vector<8x4xf32>
    %80 = arith.mulf %78, %79 : vector<8x4xf32>
    %81 = vector.extract_strided_slice %14 {offsets = [0, 12], sizes = [1, 4], strides = [1, 1]} : vector<1x48xf32> to vector<1x4xf32>
    %82 = vector.broadcast %81 : vector<1x4xf32> to vector<8x4xf32>
    %83 = arith.mulf %80, %82 : vector<8x4xf32>
    %84 = vector.extract_strided_slice %15 {offsets = [0, 12], sizes = [1, 4], strides = [1, 1]} : vector<1x48xf32> to vector<1x4xf32>
    %85 = vector.broadcast %84 : vector<1x4xf32> to vector<8x4xf32>
    %86 = arith.addf %83, %85 : vector<8x4xf32>
    %87 = vector.broadcast %38 : vector<8x1xf32> to vector<8x16xf32>
    %88 = arith.subf %11, %87 : vector<8x16xf32>
    %89 = vector.broadcast %66 : vector<8x1xf32> to vector<8x16xf32>
    %90 = arith.mulf %88, %89 : vector<8x16xf32>
    %91 = vector.extract_strided_slice %14 {offsets = [0, 16], sizes = [1, 16], strides = [1, 1]} : vector<1x48xf32> to vector<1x16xf32>
    %92 = vector.broadcast %91 : vector<1x16xf32> to vector<8x16xf32>
    %93 = arith.mulf %90, %92 : vector<8x16xf32>
    %94 = vector.extract_strided_slice %15 {offsets = [0, 16], sizes = [1, 16], strides = [1, 1]} : vector<1x48xf32> to vector<1x16xf32>
    %95 = vector.broadcast %94 : vector<1x16xf32> to vector<8x16xf32>
    %96 = arith.addf %93, %95 : vector<8x16xf32>
    %97 = vector.broadcast %38 : vector<8x1xf32> to vector<8x16xf32>
    %98 = arith.subf %12, %97 : vector<8x16xf32>
    %99 = vector.broadcast %66 : vector<8x1xf32> to vector<8x16xf32>
    %100 = arith.mulf %98, %99 : vector<8x16xf32>
    %101 = vector.extract_strided_slice %14 {offsets = [0, 32], sizes = [1, 16], strides = [1, 1]} : vector<1x48xf32> to vector<1x16xf32>
    %102 = vector.broadcast %101 : vector<1x16xf32> to vector<8x16xf32>
    %103 = arith.mulf %100, %102 : vector<8x16xf32>
    %104 = vector.extract_strided_slice %15 {offsets = [0, 32], sizes = [1, 16], strides = [1, 1]} : vector<1x48xf32> to vector<1x16xf32>
    %105 = vector.broadcast %104 : vector<1x16xf32> to vector<8x16xf32>
    %106 = arith.addf %103, %105 : vector<8x16xf32>
    %107 = vector.extract_strided_slice %22 {offsets = [0, 0], sizes = [12, 32], strides = [1, 1]} : vector<48x32xf32> to vector<12x32xf32>
    %cst_22 = arith.constant dense<0.000000e+00> : vector<8x32xf32>
    %108 = tpu.matmul %76, %107, %cst_22 {dimension_numbers = #tpu.dot_dimension_numbers<[1], [0], [0], [1], [0, 0, 1, 1], [], []>} : vector<8x12xf32>, vector<12x32xf32>, vector<8x32xf32> -> vector<8x32xf32>
    %109 = vector.extract_strided_slice %22 {offsets = [12, 0], sizes = [4, 32], strides = [1, 1]} : vector<48x32xf32> to vector<4x32xf32>
    %cst_23 = arith.constant dense<0.000000e+00> : vector<8x32xf32>
    %110 = tpu.matmul %86, %109, %cst_23 {dimension_numbers = #tpu.dot_dimension_numbers<[1], [0], [0], [1], [0, 0, 1, 1], [], []>} : vector<8x4xf32>, vector<4x32xf32>, vector<8x32xf32> -> vector<8x32xf32>
    %111 = arith.addf %108, %110 : vector<8x32xf32>
    %112 = vector.extract_strided_slice %22 {offsets = [16, 0], sizes = [16, 32], strides = [1, 1]} : vector<48x32xf32> to vector<16x32xf32>
    %cst_24 = arith.constant dense<0.000000e+00> : vector<8x32xf32>
    %113 = tpu.matmul %96, %112, %cst_24 {dimension_numbers = #tpu.dot_dimension_numbers<[1], [0], [0], [1], [0, 0, 1, 1], [], []>} : vector<8x16xf32>, vector<16x32xf32>, vector<8x32xf32> -> vector<8x32xf32>
    %114 = arith.addf %111, %113 : vector<8x32xf32>
    %115 = vector.extract_strided_slice %22 {offsets = [32, 0], sizes = [16, 32], strides = [1, 1]} : vector<48x32xf32> to vector<16x32xf32>
    %cst_25 = arith.constant dense<0.000000e+00> : vector<8x32xf32>
    %116 = tpu.matmul %106, %115, %cst_25 {dimension_numbers = #tpu.dot_dimension_numbers<[1], [0], [0], [1], [0, 0, 1, 1], [], []>} : vector<8x16xf32>, vector<16x32xf32>, vector<8x32xf32> -> vector<8x32xf32>
    %117 = arith.addf %114, %116 : vector<8x32xf32>
    %118 = vector.broadcast %16 : vector<1x32xf32> to vector<8x32xf32>
    %119 = arith.addf %117, %118 : vector<8x32xf32>
    %cst_26 = arith.constant 0.000000e+00 : f32
    %120 = vector.broadcast %cst_26 : f32 to vector<8x32xf32>
    %121 = arith.maximumf %119, %120 : vector<8x32xf32>
    %cst_27 = arith.constant dense<0.000000e+00> : vector<8xf32>
    %122 = vector.multi_reduction <add>, %121, %cst_27 [1] : vector<8x32xf32> to vector<8xf32>
    %123 = vector.shape_cast %122 : vector<8xf32> to vector<8x1xf32>
    %cst_28 = arith.constant 3.200000e+01 : f32
    %124 = vector.broadcast %cst_28 : f32 to vector<8x1xf32>
    %125 = arith.divf %123, %124 : vector<8x1xf32>
    %126 = vector.broadcast %125 : vector<8x1xf32> to vector<8x32xf32>
    %127 = arith.subf %121, %126 : vector<8x32xf32>
    %128 = arith.mulf %127, %127 : vector<8x32xf32>
    %cst_29 = arith.constant dense<0.000000e+00> : vector<8xf32>
    %129 = vector.multi_reduction <add>, %128, %cst_29 [1] : vector<8x32xf32> to vector<8xf32>
    %130 = vector.shape_cast %129 : vector<8xf32> to vector<8x1xf32>
    %cst_30 = arith.constant 3.200000e+01 : f32
    %131 = vector.broadcast %cst_30 : f32 to vector<8x1xf32>
    %132 = arith.divf %130, %131 : vector<8x1xf32>
    %133 = vector.broadcast %125 : vector<8x1xf32> to vector<8x32xf32>
    %134 = arith.subf %121, %133 : vector<8x32xf32>
    %cst_31 = arith.constant 9.99999974E-6 : f32
    %135 = vector.broadcast %cst_31 : f32 to vector<8x1xf32>
    %136 = arith.addf %132, %135 : vector<8x1xf32>
    %137 = math.rsqrt %136 : vector<8x1xf32>
    %138 = vector.broadcast %137 : vector<8x1xf32> to vector<8x32xf32>
    %139 = arith.mulf %134, %138 : vector<8x32xf32>
    %140 = vector.broadcast %17 : vector<1x32xf32> to vector<8x32xf32>
    %141 = arith.mulf %139, %140 : vector<8x32xf32>
    %142 = vector.broadcast %18 : vector<1x32xf32> to vector<8x32xf32>
    %143 = arith.addf %141, %142 : vector<8x32xf32>
    %cst_32 = arith.constant dense<0.000000e+00> : vector<8x32xf32>
    %144 = tpu.matmul %143, %23, %cst_32 {dimension_numbers = #tpu.dot_dimension_numbers<[1], [0], [0], [1], [0, 0, 1, 1], [], []>} : vector<8x32xf32>, vector<32x32xf32>, vector<8x32xf32> -> vector<8x32xf32>
    %145 = vector.broadcast %19 : vector<1x32xf32> to vector<8x32xf32>
    %146 = arith.addf %144, %145 : vector<8x32xf32>
    %cst_33 = arith.constant 0.000000e+00 : f32
    %147 = vector.broadcast %cst_33 : f32 to vector<8x32xf32>
    %148 = arith.maximumf %146, %147 : vector<8x32xf32>
    %cst_34 = arith.constant dense<0.000000e+00> : vector<8xf32>
    %149 = vector.multi_reduction <add>, %148, %cst_34 [1] : vector<8x32xf32> to vector<8xf32>
    %150 = vector.shape_cast %149 : vector<8xf32> to vector<8x1xf32>
    %cst_35 = arith.constant 3.200000e+01 : f32
    %151 = vector.broadcast %cst_35 : f32 to vector<8x1xf32>
    %152 = arith.divf %150, %151 : vector<8x1xf32>
    %153 = vector.broadcast %152 : vector<8x1xf32> to vector<8x32xf32>
    %154 = arith.subf %148, %153 : vector<8x32xf32>
    %155 = arith.mulf %154, %154 : vector<8x32xf32>
    %cst_36 = arith.constant dense<0.000000e+00> : vector<8xf32>
    %156 = vector.multi_reduction <add>, %155, %cst_36 [1] : vector<8x32xf32> to vector<8xf32>
    %157 = vector.shape_cast %156 : vector<8xf32> to vector<8x1xf32>
    %cst_37 = arith.constant 3.200000e+01 : f32
    %158 = vector.broadcast %cst_37 : f32 to vector<8x1xf32>
    %159 = arith.divf %157, %158 : vector<8x1xf32>
    %160 = vector.broadcast %152 : vector<8x1xf32> to vector<8x32xf32>
    %161 = arith.subf %148, %160 : vector<8x32xf32>
    %cst_38 = arith.constant 9.99999974E-6 : f32
    %162 = vector.broadcast %cst_38 : f32 to vector<8x1xf32>
    %163 = arith.addf %159, %162 : vector<8x1xf32>
    %164 = math.rsqrt %163 : vector<8x1xf32>
    %165 = vector.broadcast %164 : vector<8x1xf32> to vector<8x32xf32>
    %166 = arith.mulf %161, %165 : vector<8x32xf32>
    %167 = vector.broadcast %20 : vector<1x32xf32> to vector<8x32xf32>
    %168 = arith.mulf %166, %167 : vector<8x32xf32>
    %169 = vector.broadcast %21 : vector<1x32xf32> to vector<8x32xf32>
    %170 = arith.addf %168, %169 : vector<8x32xf32>
    %cst_39 = arith.constant dense<0.000000e+00> : vector<8x4xf32>
    %171 = tpu.matmul %170, %24, %cst_39 {dimension_numbers = #tpu.dot_dimension_numbers<[1], [0], [0], [1], [0, 0, 1, 1], [], []>} : vector<8x32xf32>, vector<32x4xf32>, vector<8x4xf32> -> vector<8x4xf32>
    %172 = vector.broadcast %25 : vector<1x4xf32> to vector<8x4xf32>
    %173 = arith.addf %171, %172 : vector<8x4xf32>
    %c0_40 = arith.constant 0 : index
    %c0_41 = arith.constant 0 : index
    %174 = vector.load %arg5[%c0_40, %c0_41] : memref<8x4xf32, #tpu.memory_space<vmem>>, vector<8x4xf32>
    tpu.vector_store %arg5[%c0_40, %c0_41], %173 {strides = array<i32>} : memref<8x4xf32, #tpu.memory_space<vmem>>, vector<8x4xf32>,
    return
  }
  func.func @transform_0(%arg0: i32) -> (i32, i32) {
    %c0_i32 = arith.constant 0 : i32
    %c0_i32_0 = arith.constant 0 : i32
    return %arg0, %c0_i32 : i32, i32
  }
  func.func @transform_1(%arg0: i32) -> (i32, i32) {
    %c0_i32 = arith.constant 0 : i32
    %c0_i32_0 = arith.constant 0 : i32
    return %arg0, %c0_i32 : i32, i32
  }
  func.func @transform_2(%arg0: i32) -> (i32, i32) {
    %c0_i32 = arith.constant 0 : i32
    %c0_i32_0 = arith.constant 0 : i32
    return %arg0, %c0_i32 : i32, i32
  }
  func.func @transform_3(%arg0: i32) -> (i32, i32) {
    %c0_i32 = arith.constant 0 : i32
    %c0_i32_0 = arith.constant 0 : i32
    %c0_i32_1 = arith.constant 0 : i32
    return %c0_i32, %c0_i32_0 : i32, i32
  }
  func.func @transform_4(%arg0: i32) -> (i32, i32) {
    %c0_i32 = arith.constant 0 : i32
    %c0_i32_0 = arith.constant 0 : i32
    return %arg0, %c0_i32 : i32, i32
  }
}

</mosaic_0001>

<bundles_post_ra>
// kernel: diffusion_mlp_forward.1
= control target key start
LH: loop header
LB: loop body
LE: loop exit
PB: predicated region body
PF: predicated region fallthrough
CT: control target
= control target key end

     0   :  { %v1009_v1 = vmov 0   ;;  %s1220_s0 = inlined_call_operand.vmem [shape: f32[2,12], index: 0, kind: input, shape index: {}]   ;;  %s1221_s1 = inlined_call_operand.vmem [shape: f32[2,4], index: 1, kind: input, shape index: {}]   ;;  %s1222_s2 = inlined_call_operand.vmem [shape: f32[2,1], index: 2, kind: input, shape index: {}]   ;;  %s1223_s3 = inlined_call_operand.vmem [shape: f32[128,128], index: 3, kind: input, shape index: {}]   ;;  %s1224_s4 = inlined_call_operand.hbm [shape: f32[2,4], index: 4, kind: output, shape index: {}]  }
   0x1   :  { %v20_v0 = vld [vmem:[%s1222_s2] sm:$0xff]  ;;  %974 = vset.pattern.permute.xlu0 %v1009_v1 }
   0x2   :  { %29 = vperm.xlu0 %974, %v20_v0  }
   0x3   :  { %9 = vsyncpa [#allocation3], 0  ;;  %v1055_v2 = vld [vmem:[%s1221_s1] sm:$0xff]  ;;  %vm260_vm0 = vcmask 31744   ;;  %vm256_vm1 = vcmask 97280   ;;  %v21_v6 = vlaneseq  ;;  %vm265_vm12 = vcmask 130048  }
   0x4   :  { %v1060_v3 = vld [vmem:[%s1220_s0] sm:$0xff]  ;;  %v261_v4 = vsel %vm260_vm0, %v1055_v2, 0.0  ;;  %v1010_v24 = vmov 683565275   ;;  %v1011_v26 = vmov 2475754826  }
   0x5   :  { %v257_v5 = vsel %vm256_vm1, %v1060_v3, 0.0  ;;  %262 = vadd.xlane.f32.xlu1 %v261_v4  ;;  %v22_v7 = vand.u32 127, %v21_v6  ;;  %v1012_v29 = vmov 2131351028   ;;  %v1013_v32 = vmov 2102212464  }
   0x6   :  { %v1014_v35 = vmov 920167782   ;;  %v1015_v38 = vmov 1326507024   ;;  %s1016_s2 = smov 116   ;;  %s1017_s21 = smov 112  }
   0x7   :  { %v23_v8 = vcvt.s32.f32 %v22_v7  ;;  %s1018_s22 = smov 96  }
   0x9   :  { %v24_v9 = vmul.f32 -0.6140227, %v23_v8 }
   0xb   :  { %v25_v10 = vmul.f32 1.442695, %v24_v9 }
   0xd   :  { %975 = vpow2.f32 %v25_v10 }
  0x1a   :  { %v976_v11 = vpop.eup %975 }
  0x21   :  { %258 = vadd.xlane.f32.xlu0 %v257_v5 }
  0x7d   :  { %v30_v12 = vpop.permute.xlu0 %29 }
  0x7e   :  { %v1067_v13 = vmul.f32 %v976_v11, %v30_v12 }
  0x80   :  { %v36_v14 = vand.u32 2139095040, %v1067_v13  ;;  %v33_v18 = vand.u32 2147483647, %v1067_v13  ;;  %vm35_vm9 = vcmp.lt.s32.totalorder %v1067_v13, 0 }
  0x82   :  { %v37_v15 = vshrl.u32 %v36_v14, 23  ;;  %v40_v21 = vand.u32 8388607, %v33_v18  ;;  %vm34_vm10 = vcmp.le.f32.partialorder %v33_v18, 0.7853982 }
  0x84   :  { %v869_v16 = vadd.s32 4294967169, %v37_v15  ;;  %v41_v40 = vor.u32 8388608, %v40_v21 }
  0x86   :  { %v43_v17 = vadd.s32 1, %v869_v16  ;;  %v81_v54 = vshll.u32 %v41_v40, 8 }
  0x88   :  { %vm44_vm2 = vcmp.gt.s32.totalorder %v43_v17, 0 }
  0x89   :  { %v45_v19 = vsel %vm44_vm2, %v43_v17, 0 }
  0x8a   :  { %v47_v20 = vand.u32 31, %v45_v19  ;;  %v46_v23 = vshrl.u32 %v45_v19, 5 }
  0x8c   :  { %v48_v22 = vsub.s32 32, %v47_v20  ;;  %v50_v25 = vshll.u32 %v1010_v24, %v47_v20  ;;  %v53_v27 = vshll.u32 %v1011_v26, %v47_v20  ;;  %v56_v31 = vshll.u32 %v1012_v29, %v47_v20 }
  0x8d   :  { %v59_v34 = vshll.u32 %v1013_v32, %v47_v20  ;;  %v62_v37 = vshll.u32 %v1014_v35, %v47_v20  ;;  %vm65_vm3 = vcmp.lt.s32.totalorder %v46_v23, 1  ;;  %vm68_vm4 = vcmp.lt.s32.totalorder %v46_v23, 4 }
  0x8e   :  { %v51_v28 = vshrl.u32 %v1011_v26, %v48_v22  ;;  %v54_v30 = vshrl.u32 %v1012_v29, %v48_v22  ;;  %v57_v33 = vshrl.u32 %v1013_v32, %v48_v22  ;;  %v60_v36 = vshrl.u32 %v1014_v35, %v48_v22 }
  0x8f   :  { %v63_v39 = vshrl.u32 %v1015_v38, %v48_v22  ;;  %v49_v49 = vshrl.u32 %v1010_v24, %v48_v22  ;;  %vm67_vm5 = vcmp.lt.s32.totalorder %v46_v23, 3  ;;  %vm66_vm6 = vcmp.lt.s32.totalorder %v46_v23, 2 }
  0x90   :  { %v52_v41 = vor.u32 %v51_v28, %v50_v25  ;;  %v55_v42 = vor.u32 %v54_v30, %v53_v27  ;;  %v58_v43 = vor.u32 %v57_v33, %v56_v31  ;;  %v61_v44 = vor.u32 %v60_v36, %v59_v34 }
  0x91   :  { %v64_v45 = vor.u32 %v63_v39, %v62_v37 }
  0x92   :  { %v70_v46 = vsel %vm68_vm4, %v58_v43, 2102212464  ;;  %v73_v47 = vsel %vm65_vm3, %v52_v41, %v55_v42  ;;  %v77_v48 = vsel %vm65_vm3, %v55_v42, %v58_v43  ;;  %v74_v50 = vsel %vm68_vm4, %v61_v44, 920167782 }
  0x93   :  { %v78_v51 = vsel %vm68_vm4, %v64_v45, 1326507024  ;;  %v75_v52 = vsel %vm67_vm5, %v58_v43, %v74_v50  ;;  %v69_v55 = vsel %vm65_vm3, %v49_v49, %v52_v41  ;;  %v71_v56 = vsel %vm67_vm5, %v55_v42, %v70_v46 }
  0x94   :  { %v79_v53 = vsel %vm67_vm5, %v61_v44, %v78_v51  ;;  %v76_v57 = vsel %vm66_vm6, %v73_v47, %v75_v52  ;;  %v72_v63 = vsel %vm66_vm6, %v69_v55, %v71_v56  ;;  %vm125_vm4 = vweird.f32 %v1067_v13  ;;  %v263_v56 = vpop.xlane.xlu1 %262 }
  0x95   :  { %v80_v58 = vsel %vm66_vm6, %v77_v48, %v79_v53  ;;  %v1076_v61 = vmul.u32.u64.low %v81_v54, %v76_v57  ;;  %v1077_v62 = vmul.u32.u64.high %v81_v54, %v76_v57, %v1076_v61  ;;  %v88_v1 = vmul.u32 %v81_v54, %v72_v63 }
  0x96   :  { %v1073_v59 = vmul.u32.u64.low %v81_v54, %v80_v58  ;;  %v1074_v60 = vmul.u32.u64.high %v81_v54, %v80_v58, %v1073_v59  ;;  %v1091_v52 = vshrl.u32 %v21_v6, 7  ;;  %v1097_v54 = vld [vmem:[%s1223_s3] sm:$0xff]  ;;  %vm347_vm5 = vcmask 1043456  }
  0x97   :  { %v91_v0 = vadd.s32 1, %v1077_v62  ;;  %vm1020_vm6 = vmmov 0  }
  0x98   :  { %vm90_vm7 = vc.u32 %v1074_v60, %v1076_v61  ;;  %v89_v17 = vadd.s32 %v1076_v61, %v1074_v60  ;;  %v305_v53 = vsub.s32 0, %v1091_v52  ;;  %v310_v6 = vsub.s32 1, %v1091_v52 }
  0x99   :  { %v92_v4 = vsel %vm90_vm7, %v91_v0, %v1077_v62 }
  0x9a   :  { %v93_v5 = vadd.s32 %v92_v4, %v88_v1  ;;  %v1107_v55 = vrot.slane %v1097_v54, %v310_v6  ;;  %v645_v6 = vsub.s32 2, %v1091_v52 }
  0x9c   :  { %v94_v7 = vadd.s32 536870912, %v93_v5  ;;  %320 = vrot.lane.b32.xlu0 %v1107_v55, %s1016_s2 }
  0x9e   :  { %v95_v8 = vshrl.u32 %v94_v7, 30 }
  0xa0   :  { %v96_v9 = vshll.u32 %v95_v8, 30  ;;  %v119_v31 = vsub.s32 4, %v95_v8  ;;  %338 = vrot.lane.b32.xlu0 %v1107_v55, %s1018_s22 }
  0xa2   :  { %v97_v10 = vsub.s32 %v93_v5, %v96_v9  ;;  %v120_v34 = vsel %vm35_vm9, %v119_v31, %v95_v8 }
  0xa3   :  { %v122_v35 = vsel %vm34_vm10, 0, %v120_v34 }
  0xa4   :  { %v99_v11 = vsub.s32 0, %v97_v10  ;;  %v126_v36 = vadd.s32 3, %v122_v35  ;;  %v230_v38 = vand.u32 3, %v122_v35 }
  0xa6   :  { %v870_v12 = vmin.u32 %v99_v11, %v97_v10  ;;  %v127_v37 = vand.u32 3, %v126_v36  ;;  %vm235_vm13 = vcmp.eq.s32.totalorder %v230_v38, 2  ;;  %vm232_vm15 = vcmp.eq.s32.totalorder %v230_v38, 0 }
  0xa7   :  { %vm231_vm3 = vcmp.lt.s32.totalorder %v230_v38, 2 }
  0xa8   :  { %v101_v14 = vclz %v870_v12  ;;  %vm132_vm11 = vcmp.eq.s32.totalorder %v127_v37, 2  ;;  %vm129_vm14 = vcmp.eq.s32.totalorder %v127_v37, 0  ;;  %vm128_vm2 = vcmp.lt.s32.totalorder %v127_v37, 2 }
  0xaa   :  { %v871_v15 = vadd.s32 4294967294, %v101_v14  ;;  %v259_v57 = vpop.xlane.xlu0 %258 }
  0xab   :  { %v264_v59 = vadd.f32 %v263_v56, %v259_v57 }
  0xac   :  { %vm872_vm8 = vcmp.lt.s32.totalorder %v871_v15, 0 }
  0xad   :  { %v104_v16 = vsel %vm872_vm8, 0, %v871_v15 }
  0xae   :  { %v105_v19 = vsub.s32 32, %v104_v16  ;;  %v109_v20 = vsub.s32 4294967266, %v104_v16  ;;  %v106_v21 = vshll.u32 %v97_v10, %v104_v16 }
  0xb0   :  { %v107_v22 = vshrl.u32 %v89_v17, %v105_v19  ;;  %v110_v23 = vadd.s32 127, %v109_v20  ;;  %v241_v17 = vld [vmem:[%s1223_s3 + $0x8] sm:$0xff] }
  0xb2   :  { %v108_v24 = vor.u32 %v107_v22, %v106_v21  ;;  %v111_v25 = vshll.u32 %v110_v23, 23 }
  0xb4   :  { %v112_v26 = vor.u32 4788187, %v111_v25  ;;  %v115_v28 = vcvt.s32.f32 %v108_v24 }
  0xb6   :  { %v113_v27 = vand.u32 2147483647, %v112_v26 }
  0xb8   :  { %v116_v29 = vmul.f32 %v115_v28, %v113_v27 }
  0xba   :  { %v117_v30 = vxor.u32 2147483648, %v116_v29 }
  0xbc   :  { %v118_v32 = vsel %vm35_vm9, %v117_v30, %v116_v29 }
  0xbd   :  { %v121_v33 = vsel %vm34_vm10, %v1067_v13, %v118_v32  ;;  %v1100_v13 = vrot.slane %v1097_v54, %v305_v53 }
  0xbe   :  { %977 = vcosq.f32 %v121_v33 }
  0xbf   :  { %979 = vsinq.f32 %v121_v33 }
  0xcb   :  { %v978_v39 = vpop.eup %977 }
  0xcc   :  { %v980_v40 = vpop.eup %979  ;;  %v133_v41 = vxor.u32 2147483648, %v978_v39 }
  0xcd   :  { %v130_v42 = vxor.u32 2147483648, %v980_v40 }
  0xce   :  { %v134_v43 = vsel %vm132_vm11, %v133_v41, %v980_v40  ;;  %v237_v18 = vsel %vm235_vm13, %v133_v41, %v980_v40 }
  0xcf   :  { %v131_v44 = vsel %vm129_vm14, %v978_v39, %v130_v42  ;;  %v234_v45 = vsel %vm232_vm15, %v978_v39, %v130_v42  ;;  %v244_v42 = vld [vmem:[%s1223_s3 + $0x20] sm:$0xff] }
  0xd0   :  { %v135_v46 = vsel %vm128_vm2, %v131_v44, %v134_v43  ;;  %v238_v47 = vsel %vm231_vm3, %v234_v45, %v237_v18  ;;  %v246_v43 = vld [vmem:[%s1223_s3 + $0x30] sm:$0xff] }
  0xd1   :  { %v136_v48 = vsel %vm125_vm4, nan, %v135_v46  ;;  %v239_v50 = vsel %vm125_vm4, nan, %v238_v47  ;;  %v243_v46 = vld [vmem:[%s1223_s3 + $0x18] sm:$0xff]  ;;  %v245_v47 = vld [vmem:[%s1223_s3 + $0x28] sm:$0xff] }
  0xd2   :  { %v266_v49 = vsel %vm265_vm12, %v136_v48, 0.0  ;;  %v270_v51 = vsel %vm265_vm12, %v239_v50, 0.0 }
  0xd3   :  { %267 = vadd.xlane.f32.xlu1 %v266_v49 }
  0xd7   :  { %271 = vadd.xlane.f32.xlu1 %v270_v51 }
  0xe8   :  { %315 = vrot.lane.b32.xlu1 %v1100_v13, %s1016_s2 }
  0xec   :  { %325 = vrot.lane.b32.xlu1 %v1100_v13, %s1017_s21 }
 0x10e   :  { %v321_v33 = vpop.permute.xlu0 %320 }
 0x112   :  { %v339_v45 = vpop.permute.xlu0 %338 }
 0x15c   :  { %v268_v58 = vpop.xlane.xlu1 %267 }
 0x15d   :  { %v269_v60 = vadd.f32 %v268_v58, %v264_v59  ;;  %v646_v59 = vrot.slane %v1097_v54, %v645_v6 }
 0x160   :  { %v272_v61 = vpop.xlane.xlu1 %271 }
 0x161   :  { %v273_v62 = vadd.f32 %v272_v61, %v269_v60 }
 0x163   :  { %v275_v63 = vmul.f32 0.020833334, %v273_v62 }
 0x164   :  { %v316_v19 = vpop.permute.xlu1 %315 }
 0x165   :  { %v276_v0 = vsub.f32 %v1060_v3, %v275_v63  ;;  %v281_v1 = vsub.f32 %v1055_v2, %v275_v63  ;;  %v287_v8 = vsub.f32 %v136_v48, %v275_v63  ;;  %v293_v11 = vsub.f32 %v239_v50, %v275_v63  ;;  %v242_v3 = vld [vmem:[%s1223_s3 + $0x10] sm:$0xff] }
 0x166   :  { %v1019_v2 = vmov 0.0   ;;  %v343_v16 = vrot.slane %v242_v3, 4 }
 0x167   :  { %v277_v4 = vmul.f32 %v276_v0, %v276_v0  ;;  %v282_v7 = vmul.f32 %v281_v1, %v281_v1  ;;  %v288_v10 = vmul.f32 %v287_v8, %v287_v8  ;;  %v294_v14 = vmul.f32 %v293_v11, %v293_v11  ;;  %912 = vmatprep.subr.mxu1 %v1019_v2 }
 0x168   :  { %907 = vmatprep.subr.mxu0 %v1019_v2  ;;  %913 = vmatpush3.msk.msra.mxu1 %vm347_vm5, %v242_v3  ;;  %v326_v20 = vpop.permute.xlu1 %325 }
 0x169   :  { %v278_v5 = vsel %vm256_vm1, %v277_v4, 0.0  ;;  %v283_v9 = vsel %vm260_vm0, %v282_v7, 0.0  ;;  %v289_v12 = vsel %vm265_vm12, %v288_v10, 0.0  ;;  %v295_v15 = vsel %vm265_vm12, %v294_v14, 0.0  ;;  %914 = vmatprep.subr.mxu1 %v1019_v2  ;;  %909 = vmatprep.mubr.msk.f32.mxu0 %vm1020_vm6, %v1019_v2  ;;  %v250_v10 = vld [vmem:[%s1223_s3 + $0x50] sm:$0xff]  ;;  %v247_v14 = vld [vmem:[%s1223_s3 + $0x38] sm:$0xff] }
 0x16a   :  { %279 = vadd.xlane.f32.xlu1 %v278_v5  ;;  %908 = vmatpush3.msk.msra.mxu0 %vm347_vm5, %v343_v16 }
 0x16b   :  { %915 = vmatpush3.msra.mxu1 %v241_v17  ;;  %916 = vmatprep.mubr.msk.f32.mxu1 %vm1020_vm6, %v1019_v2  ;;  %v666_v17 = vsub.s32 3, %v1091_v52 }
 0x16c   :  { %919 = vmatprep.subr.mxu0 %v1019_v2  ;;  %926 = vmatprep.subr.mxu1 %v1019_v2 }
 0x16e   :  { %284 = vadd.xlane.f32.xlu1 %v283_v9 }
 0x172   :  { %290 = vadd.xlane.f32.xlu1 %v289_v12  ;;  %v248_v12 = vld [vmem:[%s1223_s3 + $0x40] sm:$0xff] }
 0x176   :  { %296 = vadd.xlane.f32.xlu1 %v295_v15 }
 0x187   :  { %329 = vrot.lane.b32.xlu1 %v1107_v55, %s1017_s21 }
 0x18b   :  { %334 = vrot.lane.b32.xlu1 %v1100_v13, %s1018_s22 }
 0x1f3   :  { %v280_v21 = vpop.xlane.xlu1 %279 }
 0x1f7   :  { %v285_v22 = vpop.xlane.xlu1 %284 }
 0x1f8   :  { %v286_v24 = vadd.f32 %v285_v22, %v280_v21 }
 0x1fb   :  { %v291_v23 = vpop.xlane.xlu1 %290 }
 0x1fc   :  { %v292_v25 = vadd.f32 %v291_v23, %v286_v24 }
 0x1ff   :  { %v297_v26 = vpop.xlane.xlu1 %296 }
 0x200   :  { %v298_v27 = vadd.f32 %v297_v26, %v292_v25  ;;  %v676_v26 = vsub.s32 5, %v1091_v52 }
 0x202   :  { %v299_v28 = vmul.f32 0.020833334, %v298_v27  ;;  %v677_v27 = vrot.slane %v1097_v54, %v676_v26 }
 0x203   :  { %v330_v30 = vpop.permute.xlu1 %329 }
 0x204   :  { %v300_v29 = vadd.f32 1e-05, %v299_v28 }
 0x206   :  { %981 = vrsqrt.f32 %v300_v29 }
 0x207   :  { %v335_v38 = vpop.permute.xlu1 %334 }
 0x213   :  { %v982_v31 = vpop.eup %981 }
 0x214   :  { %v313_v32 = vmul.f32 %v982_v31, %v281_v1  ;;  %v302_v34 = vmul.f32 %v982_v31, %v276_v0  ;;  %v324_v35 = vmul.f32 %v982_v31, %v287_v8  ;;  %v333_v36 = vmul.f32 %v982_v31, %v293_v11  ;;  %v249_v11 = vld [vmem:[%s1223_s3 + $0x48] sm:$0xff] }
 0x216   :  { %v318_v37 = vmul.f32 %v316_v19, %v313_v32  ;;  %v307_v39 = vmul.f32 %v1100_v13, %v302_v34  ;;  %v328_v18 = vmul.f32 %v326_v20, %v324_v35  ;;  %v337_v44 = vmul.f32 %v335_v38, %v333_v36  ;;  %v254_v38 = vld [vmem:[%s1223_s3 + $0x70] sm:$0xff] }
 0x217   :  { %v671_v19 = vsub.s32 4, %v1091_v52  ;;  %v667_v20 = vrot.slane %v1097_v54, %v666_v17 }
 0x218   :  { %v323_v40 = vadd.f32 %v321_v33, %v318_v37  ;;  %v312_v41 = vadd.f32 %v1107_v55, %v307_v39  ;;  %v332_v48 = vadd.f32 %v330_v30, %v328_v18  ;;  %v341_v49 = vadd.f32 %v339_v45, %v337_v44  ;;  %v253_v39 = vld [vmem:[%s1223_s3 + $0x68] sm:$0xff] }
 0x219   :  { %v672_v23 = vrot.slane %v1097_v54, %v671_v19  ;;  %v767_v44 = vsub.s32 6, %v1091_v52  ;;  %v772_v45 = vsub.s32 7, %v1091_v52 }
 0x21a   :  { %910 = vmatmul.mubr.msk.f32.vlgmr.msra.gmra.mxu0 %vm260_vm0, %v323_v40  ;;  %917 = vmatmul.mubr.msk.f32.vlgmr.msra.gmra.mxu1 %vm256_vm1, %v312_v41  ;;  %vm649_vm1 = vcmask 261120   ;;  %v252_v40 = vld [vmem:[%s1223_s3 + $0x60] sm:$0xff]  ;;  %v251_v41 = vld [vmem:[%s1223_s3 + $0x58] sm:$0xff] }
 0x21b   :  { %920 = vmatpush3.msra.mxu0 %v244_v42  ;;  %927 = vmatpush3.msra.mxu1 %v246_v43 }
 0x21c   :  { %921 = vmatprep.subr.mxu0 %v1019_v2  ;;  %928 = vmatprep.subr.mxu1 %v1019_v2 }
 0x21d   :  { %922 = vmatpush3.msra.mxu0 %v243_v46  ;;  %923 = vmatprep.mubr.msk.f32.mxu0 %vm1020_vm6, %v1019_v2  ;;  %v768_v46 = vrot.slane %v1097_v54, %v767_v44 }
 0x21e   :  { %929 = vmatpush3.msra.mxu1 %v245_v47  ;;  %930 = vmatprep.mubr.msk.f32.mxu1 %vm1020_vm6, %v1019_v2 }
 0x21f   :  { %924 = vmatmul.mubr.msk.f32.vlgmr.msra.gmra.mxu0 %vm265_vm12, %v332_v48  ;;  %931 = vmatmul.mubr.msk.f32.vlgmr.msra.gmra.mxu1 %vm265_vm12, %v341_v49  ;;  %v773_v49 = vrot.slane %v1097_v54, %v772_v45 }
 0x220   :  { %933 = vmatprep.subr.mxu0 %v1019_v2  ;;  %941 = vmatprep.mubr.msk.f32.mxu0 %vm1020_vm6, %v1019_v2 }
 0x221   :  { %944 = vmatprep.subr.mxu1 %v1019_v2  ;;  %952 = vmatprep.mubr.msk.f32.mxu1 %vm1020_vm6, %v1019_v2 }
 0x222   :  { %934 = vmatpush3.msra.mxu0 %v250_v10  ;;  %945 = vmatpush3.msra.mxu1 %v254_v38 }
 0x223   :  { %935 = vmatprep.subr.mxu0 %v1019_v2  ;;  %946 = vmatprep.subr.mxu1 %v1019_v2 }
 0x224   :  { %936 = vmatpush3.msra.mxu0 %v249_v11  ;;  %947 = vmatpush3.msra.mxu1 %v253_v39 }
 0x225   :  { %937 = vmatprep.subr.mxu0 %v1019_v2  ;;  %948 = vmatprep.subr.mxu1 %v1019_v2 }
 0x226   :  { %938 = vmatpush3.msra.mxu0 %v248_v12  ;;  %949 = vmatpush3.msra.mxu1 %v252_v40 }
 0x227   :  { %939 = vmatprep.subr.mxu0 %v1019_v2  ;;  %950 = vmatprep.subr.mxu1 %v1019_v2  ;;  %v884_v2 = vld [vmem:[%s1223_s3 + $0x78] ss:$0 sm:$0xff] }
 0x228   :  { %940 = vmatpush3.msra.mxu0 %v247_v14  ;;  %951 = vmatpush3.msra.mxu1 %v251_v41 }
 0x2da   :  { %v416_v50 = vpop.f32.mrf.mxu0  ;;  %v491_v51 = vpop.f32.mrf.mxu1 }
 0x2db   :  { %v492_v55 = vadd.f32 %v491_v51, %v416_v50 }
 0x2dc   :  { %v911_v53 = vpop.f32.mrf.mxu0  ;;  %v918_v13 = vpop.f32.mrf.mxu1 }
 0x2df   :  { %v564_v56 = vpop.f32.mrf.mxu0  ;;  %v638_v57 = vpop.f32.mrf.mxu1 }
 0x2e0   :  { %v568_v58 = vadd.f32 %v564_v56, %v492_v55 }
 0x2e1   :  { %v925_v60 = vpop.f32.mrf.mxu0  ;;  %v932_v61 = vpop.f32.mrf.mxu1 }
 0x2e2   :  { %v642_v62 = vadd.f32 %v638_v57, %v568_v58 }
 0x2e4   :  { %v647_v63 = vadd.f32 %v646_v59, %v642_v62 }
 0x2e6   :  { %v648_v0 = vmax.f32 %v647_v63, 0.0 }
 0x2e8   :  { %v650_v1 = vsel %vm649_vm1, %v648_v0, 0.0 }
 0x2e9   :  { %651 = vadd.xlane.f32.xlu1 %v650_v1 }
 0x372   :  { %v652_v4 = vpop.xlane.xlu1 %651 }
 0x373   :  { %v654_v5 = vmul.f32 0.03125, %v652_v4 }
 0x375   :  { %v655_v7 = vsub.f32 %v648_v0, %v654_v5 }
 0x377   :  { %v656_v8 = vmul.f32 %v655_v7, %v655_v7 }
 0x379   :  { %v657_v9 = vsel %vm649_vm1, %v656_v8, 0.0 }
 0x37a   :  { %658 = vadd.xlane.f32.xlu0 %v657_v9 }
 0x403   :  { %v659_v15 = vpop.xlane.xlu0 %658 }
 0x404   :  { %v660_v3 = vmul.f32 0.03125, %v659_v15 }
 0x406   :  { %v661_v16 = vadd.f32 1e-05, %v660_v3 }
 0x408   :  { %983 = vrsqrt.f32 %v661_v16 }
 0x415   :  { %v984_v21 = vpop.eup %983 }
 0x416   :  { %v663_v22 = vmul.f32 %v984_v21, %v655_v7 }
 0x418   :  { %v668_v24 = vmul.f32 %v667_v20, %v663_v22 }
 0x41a   :  { %v673_v25 = vadd.f32 %v672_v23, %v668_v24 }
 0x41c   :  { %942 = vmatmul.mubr.msk.f32.vlgmr.msra.gmra.mxu0 %vm649_vm1, %v673_v25 }
 0x4dc   :  { %v747_v28 = vpop.f32.mrf.mxu0 }
 0x4dd   :  { %v748_v29 = vadd.f32 %v747_v28, %v677_v27 }
 0x4de   :  { %v943_v30 = vpop.f32.mrf.mxu0 }
 0x4df   :  { %v751_v31 = vmax.f32 %v748_v29, 0.0 }
 0x4e1   :  { %v752_v32 = vsel %vm649_vm1, %v751_v31, 0.0 }
 0x4e2   :  { %753 = vadd.xlane.f32.xlu0 %v752_v32 }
 0x56b   :  { %v754_v33 = vpop.xlane.xlu0 %753 }
 0x56c   :  { %v755_v34 = vmul.f32 0.03125, %v754_v33 }
 0x56e   :  { %v756_v35 = vsub.f32 %v751_v31, %v755_v34 }
 0x570   :  { %v757_v36 = vmul.f32 %v756_v35, %v756_v35 }
 0x572   :  { %v758_v37 = vsel %vm649_vm1, %v757_v36, 0.0 }
 0x573   :  { %759 = vadd.xlane.f32.xlu1 %v758_v37 }
 0x5fc   :  { %v760_v42 = vpop.xlane.xlu1 %759 }
 0x5fd   :  { %v761_v43 = vmul.f32 0.03125, %v760_v42 }
 0x5ff   :  { %v762_v18 = vadd.f32 1e-05, %v761_v43 }
 0x601   :  { %985 = vrsqrt.f32 %v762_v18 }
 0x60e   :  { %v986_v47 = vpop.eup %985 }
 0x60f   :  { %v764_v48 = vmul.f32 %v986_v47, %v756_v35 }
 0x611   :  { %v769_v50 = vmul.f32 %v768_v46, %v764_v48 }
 0x613   :  { %v774_v51 = vadd.f32 %v773_v49, %v769_v50 }
 0x615   :  { %953 = vmatmul.mubr.msk.f32.vlgmr.msra.gmra.mxu1 %vm649_vm1, %v774_v51 }
 0x6d5   :  { %v848_v53 = vpop.f32.mrf.mxu1 }
 0x6d6   :  { %v849_v13 = vadd.f32 %v884_v2, %v848_v53 }
 0x6d7   :  { %v954_v6 = vpop.f32.mrf.mxu1 }
 0x6d8   :  { %852 = vst.msk [vmem:[#allocation2] sm:$0xff] %vm260_vm0, %v849_v13 }
 0x6d9   :  { %857 = vsyncadd [#allocation3], 96  ;;  %s1021_s24 = smov [#allocation2]  }
 0x6da   :  { %s858_s25 = sshll.u32 %s1021_s24, 4  ;;  %s859_s25 = int_to_ptr.vmem [resolvable:$true] %s858_s25 }
 0x6db   :  { %s987_s26 = scalar_lea.vmem %s859_s25, 32  ;;  %s991_s27 = scalar_lea.vmem %s859_s25, 128 }
 0x6dc   :  { %p988_p0 = scmp.ne.s32.totalorder %s859_s25, %s987_s26  ;;  %p992_p1 = scmp.lt.s32.totalorder %s859_s25, %s859_s25 }
 0x6dd   :  { %p993_p2 = scmp.lt.s32.totalorder %s991_s27, %s987_s26 }
 0x6df   :  { %p994_p3 = por %p993_p2, %p992_p1 }
 0x6e1   :  { %p995_p4 = pnand %p994_p3, %p988_p0 }
 0x6e3   :  { %998 = shalt.err (!%p995_p4)
}
 0x6e4   :  { %s1022_s28 = smov 32   ;;  %s1023_s29 = smov 2  }
 0x6e5   :  { %864 = dma.vmem_to_hbm [thread:$0]  %s859_s25, 32, %s1224_s4, [#allocation3], %s1022_s28, %s1022_s28, %s1023_s29  }
 0x6e6   :  { %1007 = dma.done.wait [#allocation3], 128  }
 0x6e7   :  { %1008 = vsyncadd [#allocation3], 4294967168 }
 0x6e8   :  { %868 = vsyncpa [#allocation3], 1 }

</bundles_post_ra>
